<compile_context>
chip_gen: v6e
topology: v6e:2x2x1
jax: 0.10.0
libtpu: 0.0.40
codegen_flags: <defaults>
</compile_context>

<pallas_src>
import functools

import jax
import jax.numpy as jnp
from jax.experimental import pallas as pl
from jax.experimental.pallas import tpu as pltpu


def _round_up(x, m):
    return (x + m - 1) // m * m


def _ode_merge_kernel(scal_ref, z_ref, w1_ref, b1_ref, w2_ref, b2_ref,
                      w3c_ref, out_ref):
    # scal_ref: SMEM (3,) = [a, b, b3]
    a = scal_ref[0]
    b = scal_ref[1]
    b3 = scal_ref[2]

    zt = z_ref[...]                       # (F, TL): features on sublanes, rows on lanes
    y1 = zt[0:1, :]                       # (1, TL)
    y2 = zt[1:2, :]                       # (1, TL)
    x = zt[2:, :]                         # (input_num, TL)

    comp1 = a * y1 + b * y2               # (1, TL)

    # prepross: Linear(input_num -> output_num), lane-major on the MXU.
    pre = jnp.dot(w1_ref[...], x, preferred_element_type=jnp.float32) + b1_ref[...]
    # nn_merge MLP: Linear(output_num -> hidden) -> tanh -> Linear(hidden -> 1)
    h = jnp.tanh(
        jnp.dot(w2_ref[...], pre, preferred_element_type=jnp.float32) + b2_ref[...])
    # Final 1-wide projection as VPU multiply + sublane reduce (keeps the
    # degenerate M=1 matmul off the MXU result-FIFO latency path).
    comp2 = jnp.sum(w3c_ref[...] * h, axis=0, keepdims=True) + b3     # (1, TL)

    out_ref[...] = (comp1 + comp2).astype(out_ref.dtype)


@functools.partial(jax.jit, static_argnames=("tl_max",))
def neural_ode_merge_final(t, z, params, *, tl_max=65536):
    """Pallas forward of NeuralODE_merge_final.  t is unused (as in PyTorch)."""
    del t
    B, S, F = z.shape
    input_num = F - 2
    a, b, w1, b1, w2, b2, w3, b3 = (
        params["a"], params["b"], params["w1"], params["b1"],
        params["w2"], params["b2"], params["w3"], params["b3"])
    output_num = w1.shape[0]
    hidden = w2.shape[0]

    M = B * S
    # Rows on the lane axis: largest lane tile (multiple of 128) that still
    # fits comfortably in VMEM on v5e/v6e/v7x (~8 MiB double-buffered at 64K),
    # then pad M so the grid has no partial blocks.
    tl = max(128, min(tl_max, _round_up(M, 128)))
    m_pad = _round_up(M, tl)

    # (B, S, F) -> (F, M_pad): feature-on-sublane, row-on-lane layout.
    # TODO(synk): this transpose is a standalone XLA pass; fuse it into the
    # producer of z when this kernel runs inside a larger pipeline.
    zt = jnp.transpose(z.reshape(M, F))                    # (F, M)
    zt = jnp.pad(zt, ((0, 0), (0, m_pad - M)))             # (F, M_pad)

    scal = jnp.stack([
        jnp.asarray(a, jnp.float32),
        jnp.asarray(b, jnp.float32),
        jnp.asarray(b3, jnp.float32).reshape(()),
    ])                                                     # (3,) -> SMEM
    b1c = b1.reshape(output_num, 1)
    b2c = b2.reshape(hidden, 1)
    w3c = w3.reshape(hidden, 1)                            # final projection column

    grid = (m_pad // tl,)
    out = pl.pallas_call(
        _ode_merge_kernel,
        out_shape=jax.ShapeDtypeStruct((1, m_pad), z.dtype),
        grid=grid,
        in_specs=[
            pl.BlockSpec(memory_space=pltpu.MemorySpace.SMEM),        # [a, b, b3]
            pl.BlockSpec((F, tl), lambda i: (0, i)),                  # z (lane-major)
            pl.BlockSpec((output_num, input_num), lambda i: (0, 0)),  # w1
            pl.BlockSpec((output_num, 1), lambda i: (0, 0)),          # b1 column
            pl.BlockSpec((hidden, output_num), lambda i: (0, 0)),     # w2
            pl.BlockSpec((hidden, 1), lambda i: (0, 0)),              # b2 column
            pl.BlockSpec((hidden, 1), lambda i: (0, 0)),              # w3 column
        ],
        out_specs=pl.BlockSpec((1, tl), lambda i: (0, i)),            # lane-dense out
        compiler_params=pltpu.CompilerParams(
            dimension_semantics=("parallel",),
            vmem_limit_bytes=32 * 1024 * 1024),
    )(scal, zt, w1, b1c, w2, b2c, w3c)

    return out.reshape(m_pad)[:M].reshape(B, S, 1)


def reference_forward(t, z, params):
    """Pure-JAX reference (mirrors the PyTorch forward semantics)."""
    del t
    y1 = z[:, :, 0:1]
    y2 = z[:, :, 1:2]
    x = z[:, :, 2:]
    comp1 = params["a"] * y1 + params["b"] * y2
    pre = x @ params["w1"].T + params["b1"]
    h = jnp.tanh(pre @ params["w2"].T + params["b2"])
    comp2 = h @ params["w3"].T + params["b3"]
    return comp1 + comp2


def init_params(key, input_num, output_num, hidden):
    ks = jax.random.split(key, 8)
    return {
        "a": jnp.float32(0.3),
        "b": jnp.float32(-0.7),
        # prepross: nn.Linear(input_num, output_num)
        "w1": 0.2 * jax.random.normal(ks[0], (output_num, input_num), jnp.float32),
        "b1": 0.1 * jax.random.normal(ks[1], (output_num,), jnp.float32),
        # nn_merge MLP (synthetic stand-in)
        "w2": 0.2 * jax.random.normal(ks[2], (hidden, output_num), jnp.float32),
        "b2": 0.1 * jax.random.normal(ks[3], (hidden,), jnp.float32),
        "w3": 0.2 * jax.random.normal(ks[4], (1, hidden), jnp.float32),
        "b3": 0.1 * jax.random.normal(ks[5], (1,), jnp.float32),
    }


if __name__ == "__main__":
    input_num = 4      # number of extra state channels fed to prepross
    output_num = 8     # prepross output width
    hidden = 32        # nn_merge hidden width
    B, S = 2, 8        # batch, sequence -> 16 rows total

    key = jax.random.PRNGKey(0)
    kp, kz = jax.random.split(key)
    params = init_params(kp, input_num, output_num, hidden)

    z = jax.random.normal(kz, (B, S, 2 + input_num), jnp.float32)
    t = jnp.float32(0.0)   # unused, kept for interface parity

    out = neural_ode_merge_final(t, z, params)
    out = jax.block_until_ready(out)

    ref = reference_forward(t, z, params)
    assert out.shape == (B, S, 1), out.shape
    if not jnp.allclose(out, ref, atol=1e-5, rtol=1e-5):
        raise AssertionError("Pallas kernel output mismatch vs JAX reference")

    print("KERNEL_OK")
</pallas_src>

<mosaic_0001>
module attributes {stable_mosaic.version = 11 : i64} {
  func.func @_ode_merge_kernel(%arg0: i32, %arg1: memref<3xf32, #tpu.memory_space<smem>>, %arg2: memref<6x128xf32, #tpu.memory_space<vmem>>, %arg3: memref<8x4xf32, #tpu.memory_space<vmem>>, %arg4: memref<8x1xf32, #tpu.memory_space<vmem>>, %arg5: memref<32x8xf32, #tpu.memory_space<vmem>>, %arg6: memref<32x1xf32, #tpu.memory_space<vmem>>, %arg7: memref<32x1xf32, #tpu.memory_space<vmem>>, %arg8: memref<1x128xf32, #tpu.memory_space<vmem>>) attributes {dimension_semantics = [#tpu.dimension_semantics<parallel>], iteration_bounds = array<i64: 1>, scalar_prefetch = 0 : i64, scratch_operands = 0 : i64, tpu.core_type = #tpu.core_type<tc>, window_params = [{transform_indices = @transform_0, window_bounds = array<i64: 3>}, {transform_indices = @transform_1, window_bounds = array<i64: 6, 128>}, {pipeline_mode = #tpu.pipeline_mode<synchronous>, transform_indices = @transform_2, window_bounds = array<i64: 8, 4>}, {pipeline_mode = #tpu.pipeline_mode<synchronous>, transform_indices = @transform_3, window_bounds = array<i64: 8, 1>}, {pipeline_mode = #tpu.pipeline_mode<synchronous>, transform_indices = @transform_4, window_bounds = array<i64: 32, 8>}, {pipeline_mode = #tpu.pipeline_mode<synchronous>, transform_indices = @transform_5, window_bounds = array<i64: 32, 1>}, {pipeline_mode = #tpu.pipeline_mode<synchronous>, transform_indices = @transform_6, window_bounds = array<i64: 32, 1>}, {transform_indices = @transform_7, window_bounds = array<i64: 1, 128>}]} {
    %c0 = arith.constant 0 : index
    %0 = memref.load %arg1[%c0] : memref<3xf32, #tpu.memory_space<smem>>
    %c1 = arith.constant 1 : index
    %1 = memref.load %arg1[%c1] : memref<3xf32, #tpu.memory_space<smem>>
    %c2 = arith.constant 2 : index
    %2 = memref.load %arg1[%c2] : memref<3xf32, #tpu.memory_space<smem>>
    %c0_0 = arith.constant 0 : index
    %c0_1 = arith.constant 0 : index
    %3 = vector.load %arg2[%c0_0, %c0_1] : memref<6x128xf32, #tpu.memory_space<vmem>>, vector<6x128xf32>
    %4 = vector.extract_strided_slice %3 {offsets = [0, 0], sizes = [1, 128], strides = [1, 1]} : vector<6x128xf32> to vector<1x128xf32>
    %5 = vector.extract_strided_slice %3 {offsets = [1, 0], sizes = [1, 128], strides = [1, 1]} : vector<6x128xf32> to vector<1x128xf32>
    %6 = vector.extract_strided_slice %3 {offsets = [2, 0], sizes = [4, 128], strides = [1, 1]} : vector<6x128xf32> to vector<4x128xf32>
    %7 = vector.broadcast %0 : f32 to vector<1x128xf32>
    %8 = arith.mulf %7, %4 : vector<1x128xf32>
    %9 = vector.broadcast %1 : f32 to vector<1x128xf32>
    %10 = arith.mulf %9, %5 : vector<1x128xf32>
    %11 = arith.addf %8, %10 : vector<1x128xf32>
    %c0_2 = arith.constant 0 : index
    %c0_3 = arith.constant 0 : index
    %12 = vector.load %arg3[%c0_2, %c0_3] : memref<8x4xf32, #tpu.memory_space<vmem>>, vector<8x4xf32>
    %cst = arith.constant dense<0.000000e+00> : vector<8x128xf32>
    %13 = tpu.matmul %12, %6, %cst {dimension_numbers = #tpu.dot_dimension_numbers<[1], [0], [0], [1], [0, 0, 1, 1], [], []>} : vector<8x4xf32>, vector<4x128xf32>, vector<8x128xf32> -> vector<8x128xf32>
    %c0_4 = arith.constant 0 : index
    %c0_5 = arith.constant 0 : index
    %14 = vector.load %arg4[%c0_4, %c0_5] : memref<8x1xf32, #tpu.memory_space<vmem>>, vector<8x1xf32>
    %15 = vector.broadcast %14 : vector<8x1xf32> to vector<8x128xf32>
    %16 = arith.addf %13, %15 : vector<8x128xf32>
    %c0_6 = arith.constant 0 : index
    %c0_7 = arith.constant 0 : index
    %17 = vector.load %arg5[%c0_6, %c0_7] : memref<32x8xf32, #tpu.memory_space<vmem>>, vector<32x8xf32>
    %cst_8 = arith.constant dense<0.000000e+00> : vector<32x128xf32>
    %18 = tpu.matmul %17, %16, %cst_8 {dimension_numbers = #tpu.dot_dimension_numbers<[1], [0], [0], [1], [0, 0, 1, 1], [], []>} : vector<32x8xf32>, vector<8x128xf32>, vector<32x128xf32> -> vector<32x128xf32>
    %c0_9 = arith.constant 0 : index
    %c0_10 = arith.constant 0 : index
    %19 = vector.load %arg6[%c0_9, %c0_10] : memref<32x1xf32, #tpu.memory_space<vmem>>, vector<32x1xf32>
    %20 = vector.broadcast %19 : vector<32x1xf32> to vector<32x128xf32>
    %21 = arith.addf %18, %20 : vector<32x128xf32>
    %22 = math.tanh %21 : vector<32x128xf32>
    %c0_11 = arith.constant 0 : index
    %c0_12 = arith.constant 0 : index
    %23 = vector.load %arg7[%c0_11, %c0_12] : memref<32x1xf32, #tpu.memory_space<vmem>>, vector<32x1xf32>
    %24 = vector.broadcast %23 : vector<32x1xf32> to vector<32x128xf32>
    %25 = arith.mulf %24, %22 : vector<32x128xf32>
    %cst_13 = arith.constant dense<0.000000e+00> : vector<128xf32>
    %26 = vector.multi_reduction <add>, %25, %cst_13 [0] : vector<32x128xf32> to vector<128xf32>
    %27 = vector.shape_cast %26 : vector<128xf32> to vector<1x128xf32>
    %28 = vector.broadcast %2 : f32 to vector<1x128xf32>
    %29 = arith.addf %27, %28 : vector<1x128xf32>
    %30 = arith.addf %11, %29 : vector<1x128xf32>
    %c0_14 = arith.constant 0 : index
    %c0_15 = arith.constant 0 : index
    %31 = vector.load %arg8[%c0_14, %c0_15] : memref<1x128xf32, #tpu.memory_space<vmem>>, vector<1x128xf32>
    tpu.vector_store %arg8[%c0_14, %c0_15], %30 {strides = array<i32>} : memref<1x128xf32, #tpu.memory_space<vmem>>, vector<1x128xf32>,
    return
  }
  func.func @transform_0(%arg0: i32) -> i32 {
    %c0_i32 = arith.constant 0 : i32
    %c0_i32_0 = arith.constant 0 : i32
    return %c0_i32 : i32
  }
  func.func @transform_1(%arg0: i32) -> (i32, i32) {
    %c0_i32 = arith.constant 0 : i32
    %c0_i32_0 = arith.constant 0 : i32
    return %c0_i32, %arg0 : i32, i32
  }
  func.func @transform_2(%arg0: i32) -> (i32, i32) {
    %c0_i32 = arith.constant 0 : i32
    %c0_i32_0 = arith.constant 0 : i32
    %c0_i32_1 = arith.constant 0 : i32
    return %c0_i32, %c0_i32_0 : i32, i32
  }
  func.func @transform_3(%arg0: i32) -> (i32, i32) {
    %c0_i32 = arith.constant 0 : i32
    %c0_i32_0 = arith.constant 0 : i32
    %c0_i32_1 = arith.constant 0 : i32
    return %c0_i32, %c0_i32_0 : i32, i32
  }
  func.func @transform_4(%arg0: i32) -> (i32, i32) {
    %c0_i32 = arith.constant 0 : i32
    %c0_i32_0 = arith.constant 0 : i32
    %c0_i32_1 = arith.constant 0 : i32
    return %c0_i32, %c0_i32_0 : i32, i32
  }
  func.func @transform_5(%arg0: i32) -> (i32, i32) {
    %c0_i32 = arith.constant 0 : i32
    %c0_i32_0 = arith.constant 0 : i32
    %c0_i32_1 = arith.constant 0 : i32
    return %c0_i32, %c0_i32_0 : i32, i32
  }
  func.func @transform_6(%arg0: i32) -> (i32, i32) {
    %c0_i32 = arith.constant 0 : i32
    %c0_i32_0 = arith.constant 0 : i32
    %c0_i32_1 = arith.constant 0 : i32
    return %c0_i32, %c0_i32_0 : i32, i32
  }
  func.func @transform_7(%arg0: i32) -> (i32, i32) {
    %c0_i32 = arith.constant 0 : i32
    %c0_i32_0 = arith.constant 0 : i32
    return %c0_i32, %arg0 : i32, i32
  }
}

</mosaic_0001>

<bundles_post_ra>
// kernel: neural_ode_merge_final.1
= control target key start
LH: loop header
LB: loop body
LE: loop exit
PB: predicated region body
PF: predicated region fallthrough
CT: control target
= control target key end

     0   :  { %12 = vsyncpa [#allocation3], 0  ;;  %s473_s0 = inlined_call_operand.vmem [shape: f32[3], index: 0, kind: input, shape index: {}]   ;;  %s474_s1 = inlined_call_operand.vmem [shape: f32[6,128], index: 1, kind: input, shape index: {}]   ;;  %s475_s2 = inlined_call_operand.vmem [shape: f32[8,4], index: 2, kind: input, shape index: {}]   ;;  %s476_s3 = inlined_call_operand.vmem [shape: f32[8,1], index: 3, kind: input, shape index: {}]   ;;  %s477_s4 = inlined_call_operand.vmem [shape: f32[32,8], index: 4, kind: input, shape index: {}]   ;;  %s478_s5 = inlined_call_operand.vmem [shape: f32[32,1], index: 5, kind: input, shape index: {}]   ;;  %s479_s6 = inlined_call_operand.vmem [shape: f32[32,1], index: 6, kind: input, shape index: {}]   ;;  %s480_s7 = inlined_call_operand.vmem [shape: f32[1,128], index: 7, kind: output, shape index: {}]  }
   0x1   :  { %s19_s26 = sshll.u32 %s473_s0, 4  ;;  %s20_s26 = int_to_ptr.vmem [resolvable:$true] %s19_s26 }
   0x2   :  { %s355_s27 = scalar_lea.vmem %s20_s26, 16  ;;  %p360_p1 = scmp.lt.s32.totalorder %s20_s26, %s20_s26 }
   0x3   :  { %p356_p0 = scmp.ne.s32.totalorder %s20_s26, %s355_s27  ;;  %p361_p2 = scmp.lt.s32.totalorder %s355_s27, %s355_s27 }
   0x5   :  { %p362_p3 = por %p361_p2, %p360_p1 }
   0x7   :  { %p363_p4 = pnand %p362_p3, %p356_p0 }
   0x9   :  { %366 = shalt.err (!%p363_p4)
}
   0xa   :  { %s369_s28 = smov [#allocation2]  }
   0xb   :  { %22 = dma.vmem_to_smem %s20_s26, 16, %s369_s28, [#allocation3]  }
   0xc   :  { %367 = dma.done.wait [#allocation3], 16  }
   0xd   :  { %368 = vsyncadd [#allocation3], 4294967280 }
   0xe   :  { %38 = sfence }
   0xf   :  { %v419_v0 = vld [vmem:[%s474_s1] sm:$0x3f]  ;;  %vm64_vm0 = vcmask 1043456   ;;  %v370_v1 = vmov 0.0   ;;  %vm60_vm1 = vcmask 31744   ;;  %vm371_vm2 = vmmov 0  }
  0x10   :  { %328 = vmatprep.subr.mxu0 %v370_v1  ;;  %v59_v2 = vrot.slane %v419_v0, 2  ;;  %v51_v3 = vld [vmem:[%s475_s2] sm:$0xff]  ;;  %330 = vmatprep.mubr.msk.f32.mxu0 %vm371_vm2, %v370_v1  ;;  %v372_v5 = vmov 0   ;;  %v144_v7 = vld [vmem:[%s478_s5 + $0x18] sm:$0xff]  ;;  %v268_v8 = vld [vmem:[%s479_s6 + $0x8] sm:$0xff]  ;;  %vm165_vm3 = vcmask 64512  }
  0x11   :  { %v52_v4 = vld [vmem:[%s476_s3] sm:$0xff]  ;;  %345 = vset.pattern.permute.xlu0 %v372_v5  ;;  %346 = vset.pattern.permute.xlu1 %v372_v5  ;;  %v270_v9 = vld [vmem:[%s479_s6 + $0x18] sm:$0xff]  ;;  %v142_v11 = vld [vmem:[%s478_s5 + $0x8] sm:$0xff]  ;;  %s39_s30 = sld [smem:[#allocation2]] }
  0x12   :  { %329 = vmatpush3.msk.msra.mxu0 %vm64_vm0, %v59_v2  ;;  %55 = vperm.xlu0 %345, %v52_v4   ;;  %v141_v6 = vld [vmem:[%s478_s5] sm:$0xff]  ;;  %v143_v12 = vld [vmem:[%s478_s5 + $0x10] sm:$0xff]  ;;  %v138_v19 = vld [vmem:[%s477_s4 + $0x8] sm:$0xff]  ;;  %s314_s0 = sld [smem:[#allocation2 + $0x2]] }
  0x13   :  { %331 = vmatmul.mubr.msk.f32.vlgmr.msra.gmra.mxu0 %vm60_vm1, %v51_v3  ;;  %v137_v10 = vld [vmem:[%s477_s4] sm:$0xff]  ;;  %152 = vperm.xlu1 %346, %v142_v11   ;;  %v269_v14 = vld [vmem:[%s479_s6 + $0x10] sm:$0xff]  ;;  %v140_v21 = vld [vmem:[%s477_s4 + $0x18] sm:$0xff] }
  0x14   :  { %335 = vmatprep.mubr.msk.f32.mxu1 %vm165_vm3, %v137_v10  ;;  %v267_v13 = vld [vmem:[%s479_s6] sm:$0xff]  ;;  %v139_v20 = vld [vmem:[%s477_s4 + $0x10] sm:$0xff]  ;;  %s313_s4 = sld [smem:[#allocation2 + $0x1]] }
  0x16   :  { %147 = vperm.xlu0 %345, %v141_v6  }
  0x17   :  { %157 = vperm.xlu1 %346, %v143_v12   ;;  %v43_v53 = vstv %s39_s30 }
  0x18   :  { %v44_v55 = vmul.f32 %v43_v53, %v419_v0  ;;  %v304_v59 = vstv %s314_s0 }
  0x1a   :  { %162 = vperm.xlu0 %345, %v144_v7   ;;  %v45_v49 = vstv %s313_s4 }
  0x1b   :  { %273 = vperm.xlu1 %346, %v267_v13   ;;  %v46_v51 = vmul.f32 %v45_v49, %v419_v0 }
  0x1d   :  { %v48_v56 = vrot.slane %v46_v51, 1 }
  0x1e   :  { %278 = vperm.xlu0 %345, %v268_v8  }
  0x1f   :  { %283 = vperm.xlu1 %346, %v269_v14   ;;  %v50_v60 = vadd.f32 %v48_v56, %v44_v55 }
  0x22   :  { %288 = vperm.xlu0 %345, %v270_v9  }
  0x8d   :  { %v56_v15 = vpop.permute.xlu0 %55 }
  0x8e   :  { %v153_v23 = vpop.permute.xlu1 %152 }
  0x91   :  { %v148_v22 = vpop.permute.xlu0 %147 }
  0x92   :  { %v158_v31 = vpop.permute.xlu1 %157 }
  0x95   :  { %v163_v28 = vpop.permute.xlu0 %162 }
  0x96   :  { %v274_v34 = vpop.permute.xlu1 %273 }
  0x99   :  { %v279_v37 = vpop.permute.xlu0 %278 }
  0x9a   :  { %v284_v42 = vpop.permute.xlu1 %283 }
  0x9d   :  { %v289_v45 = vpop.permute.xlu0 %288 }
  0xd3   :  { %v133_v16 = vpop.f32.mrf.mxu0 }
  0xd4   :  { %v134_v17 = vadd.f32 %v133_v16, %v56_v15 }
  0xd5   :  { %v332_v18 = vpop.f32.mrf.mxu0 }
  0xd6   :  { %333 = vmatprep.subr.mxu1 %v134_v17 }
  0xd7   :  { %334 = vmatpush3.msra.mxu1 %v134_v17 }
  0xd8   :  { %336 = vmatmul.mubr.msk.f32.vlgmr.msra.gmra.mxu1 %vm165_vm3, %v138_v19 }
  0xd9   :  { %338 = vmatprep.mubr.msk.f32.mxu1 %vm165_vm3, %v139_v20 }
  0xdc   :  { %339 = vmatmul.mubr.msk.f32.gmra.mxu1 %vm165_vm3, %v140_v21 }
 0x198   :  { %v337_v24 = vpop.f32.mrf.mxu1 }
 0x199   :  { %v250_v25 = vadd.f32 %v337_v24, %v153_v23 }
 0x19a   :  { %v244_v26 = vpop.f32.mrf.mxu1 }
 0x19b   :  { %v245_v27 = vadd.f32 %v244_v26, %v148_v22  ;;  %347 = vtanh.f32 %v250_v25 }
 0x19c   :  { %v340_v29 = vpop.f32.mrf.mxu1 }
 0x19d   :  { %349 = vtanh.f32 %v245_v27  ;;  %v260_v30 = vadd.f32 %v340_v29, %v163_v28 }
 0x19e   :  { %v254_v32 = vpop.f32.mrf.mxu1 }
 0x19f   :  { %v255_v33 = vadd.f32 %v254_v32, %v158_v31  ;;  %351 = vtanh.f32 %v260_v30 }
 0x1a1   :  { %353 = vtanh.f32 %v255_v33 }
 0x1a8   :  { %v348_v35 = vpop.eup %347 }
 0x1a9   :  { %v292_v40 = vmul.f32 %v348_v35, %v279_v37 }
 0x1aa   :  { %v350_v36 = vpop.eup %349 }
 0x1ab   :  { %v291_v38 = vmul.f32 %v350_v36, %v274_v34 }
 0x1ac   :  { %v352_v39 = vpop.eup %351 }
 0x1ad   :  { %v295_v43 = vadd.f32 %v292_v40, %v291_v38  ;;  %v294_v46 = vmul.f32 %v352_v39, %v289_v45 }
 0x1ae   :  { %v354_v41 = vpop.eup %353 }
 0x1af   :  { %v293_v44 = vmul.f32 %v354_v41, %v284_v42 }
 0x1b1   :  { %v296_v47 = vadd.f32 %v295_v43, %v293_v44 }
 0x1b3   :  { %v297_v48 = vadd.f32 %v296_v47, %v294_v46 }
 0x1b5   :  { %v298_v50 = vrot.slane %v297_v48, 4 }
 0x1b7   :  { %v299_v52 = vadd.f32 %v298_v50, %v297_v48 }
 0x1b9   :  { %v300_v54 = vrot.slane %v299_v52, 2 }
 0x1bb   :  { %v301_v57 = vadd.f32 %v300_v54, %v299_v52 }
 0x1bd   :  { %v302_v58 = vrot.slane %v301_v57, 1 }
 0x1bf   :  { %v303_v61 = vadd.f32 %v302_v58, %v301_v57 }
 0x1c1   :  { %v305_v62 = vadd.f32 %v304_v59, %v303_v61 }
 0x1c3   :  { %v306_v63 = vadd.f32 %v305_v62, %v50_v60 }
 0x1c5   :  { %307 = vst [vmem:[%s480_s7] sm:$0x1] %v306_v63 }
 0x1c6   :  { %312 = vsyncpa [#allocation3], 1 }

</bundles_post_ra>
